<compile_context>
chip_gen: v7x
topology: tpu7x:2x2x1
jax: 0.10.0
libtpu: 0.0.40
codegen_flags: <defaults>
</compile_context>

<pallas_src>
import jax
import jax.numpy as jnp
from jax.experimental import pallas as pl
from jax.experimental.pallas import tpu as pltpu


# --------------------------------------------------------------------------------------
# Deterministic parameter construction (plain JAX "glue", mirrors the PyTorch __init__)
# --------------------------------------------------------------------------------------
def gram_schmidt(vectors):
    """vectors: (N, D) -> orthonormalized (N, D); projections use full-tensor dot products
    and a final L2 normalization, matching the torch reference."""
    outputs = []
    for i in range(vectors.shape[0]):
        x = vectors[i]
        for y in outputs:
            x = x - (jnp.sum(y * x) / jnp.sum(y * y)) * y
        x = x / jnp.sqrt(jnp.sum(x * x))
        outputs.append(x)
    return jnp.stack(outputs)


def initialize_orthogonal_filters(key, c, h, w):
    """Returns (c, h, w) filters, matching initialize_orthogonal_filters semantics."""
    if h * w < c:
        n = c // (h * w)
        keys = jax.random.split(key, n)
        blocks = [
            gram_schmidt(jax.random.uniform(keys[i], (h * w, h * w), dtype=jnp.float32))
            for i in range(n)
        ]
        flt = jnp.concatenate(blocks, axis=0)
    else:
        flt = gram_schmidt(jax.random.uniform(key, (c, h * w), dtype=jnp.float32))
    return flt.reshape(-1, h, w)[:c]


# --------------------------------------------------------------------------------------
# Planning helpers
# --------------------------------------------------------------------------------------
def _cdiv(a, b):
    return -(-a // b)


def _round_up(x, m):
    return _cdiv(x, m) * m


def _vmem_capacity_bytes():
    """Per-core VMEM capacity (128 MiB v5e/v6e, 64 MiB v7x); conservative fallback."""
    try:
        cap = getattr(pltpu.get_tpu_info(), "vmem_capacity_bytes", None)
        if cap:
            return int(cap)
    except Exception:
        pass
    return 64 << 20


def _plan_tiles(B, C, HW, x_bytes, f_bytes, out_bytes, vmem_cap):
    """Pick (tb, tc, vmem_limit_bytes). The budget counts the double-buffered streamed x
    tile, the double-buffered VMEM-resident filter tile and the output tile."""
    budget = (vmem_cap * 3) // 5                      # ~60% of physical VMEM: compiler headroom
    x_buf_target = (8 << 20) if vmem_cap >= (96 << 20) else (6 << 20)

    def working_set(tb, tc):
        return (2 * tb * tc * HW * x_bytes            # streamed x, depth-2 pipelining
                + 2 * tc * HW * f_bytes               # resident filter (also double-buffered)
                + 2 * tb * tc * out_bytes)            # output tile

    # ---- channel tile: prefer full C (contiguous HBM reads), else a multiple of 128 ----
    min_tb = B if B <= 8 else 8
    if C <= 128 or working_set(min_tb, C) <= budget:
        tc = C
    else:
        tc = max(128, (C // 128) * 128)
        while tc > 128 and working_set(min_tb, tc) > budget:
            tc -= 128

    # ---- batch tile: largest multiple of 8 (or full B) within budget & x-buffer target ----
    if B <= 8:
        tb = B
    else:
        tb = 8
        while (tb + 8 <= B
               and working_set(tb + 8, tc) <= budget
               and (tb + 8) * tc * HW * x_bytes <= x_buf_target):
            tb += 8

    # ---- v7x megacore: ensure >= 2 grid steps on a parallel axis when legally splittable ----
    if _cdiv(C, tc) * _cdiv(B, tb) < 2:
        if B > 8 and tb >= 16:
            tb = max(8, (tb // 2) // 8 * 8)
        elif C > 128 and tc >= 256:
            tc = max(128, (tc // 2) // 128 * 128)
        # else: tiny B and C — a single grid step is fine (v5e/v6e are single-TC anyway).

    ws = working_set(tb, tc)
    vmem_limit = min((vmem_cap * 3) // 4, max(32 << 20, ws + (ws // 2) + (4 << 20)))
    return tb, tc, int(vmem_limit)


def _pick_chunk(tb, tc, hw):
    """Lane-aligned spatial chunk: keeps the per-chunk f32 product intermediate small
    (~<=512 KiB) while capping the static unroll length at ~16 chunks."""
    c = ((512 * 1024) // max(1, tb * tc * 4)) // 128 * 128
    c = max(128, c)
    c = max(c, _round_up(_cdiv(hw, 16), 128))
    return min(hw, c)


# --------------------------------------------------------------------------------------
# Pallas kernel: per-channel weighted spatial reduction on one (TB, TC) tile
#   out[b, c] = sum_k x[b, c, k] * f[c, k]
# --------------------------------------------------------------------------------------
def _make_kernel(hw, chunk):
    n_full = hw // chunk
    rem = hw - n_full * chunk

    def kernel(x_ref, f_ref, o_ref):
        # Chunked accumulation over the spatial axis: avoids materializing the full
        # (TB, TC, HW) f32 upcast/product in VMEM (vst-slot pressure, worst on v5e).
        acc = jnp.zeros(o_ref.shape, jnp.float32)
        for i in range(n_full):
            lo = i * chunk
            xs = x_ref[:, :, lo:lo + chunk].astype(jnp.float32)
            fs = f_ref[:, lo:lo + chunk].astype(jnp.float32)
            acc = acc + jnp.sum(xs * fs[None, :, :], axis=-1)
        if rem:
            xs = x_ref[:, :, hw - rem:].astype(jnp.float32)
            fs = f_ref[:, hw - rem:].astype(jnp.float32)
            acc = acc + jnp.sum(xs * fs[None, :, :], axis=-1)
        o_ref[...] = acc.astype(o_ref.dtype)

    return kernel


# --------------------------------------------------------------------------------------
# GramSchmidtTransform.forward (+ squeeze of the trailing (1,1) spatial dims)
# --------------------------------------------------------------------------------------
def gram_schmidt_transform_apply(x_nchw, constant_filter):
    B, C, Hin, Win = x_nchw.shape
    Cf, H, W = constant_filter.shape
    assert C == Cf

    vmem_cap = _vmem_capacity_bytes()

    f = constant_filter.astype(jnp.float32)
    x = x_nchw
    if (Hin, Win) != (H, W):
        # TODO(synk): non-divisible adaptive_avg_pool2d bins are not implemented.
        assert Hin % H == 0 and Win % W == 0
        kh, kw = Hin // H, Win // W
        if 2 * C * Hin * Win * 4 <= vmem_cap // 8:
            # Small pooling ratio: fold the pool into the filter so x is streamed from HBM
            # exactly once (no pool -> write -> reread pass).
            f = jnp.repeat(jnp.repeat(f, kh, axis=1), kw, axis=2) / float(kh * kw)
            Hp, Wp = Hin, Win
        else:
            # Large pooling ratio: pool x once in plain JAX; keeps the VMEM-resident filter
            # tile at C*H*W so VMEM stays available for large double-buffered x tiles.
            x = x.reshape(B, C, H, kh, W, kw).mean(axis=(3, 5))
            Hp, Wp = H, W
    else:
        Hp, Wp = Hin, Win

    HW = Hp * Wp
    x = x.reshape(B, C, HW)
    f = f.reshape(C, HW)
    out_dtype = jnp.result_type(x_nchw.dtype, jnp.float32)

    tb, tc, vmem_limit = _plan_tiles(
        B, C, HW,
        x_bytes=x.dtype.itemsize, f_bytes=4, out_bytes=jnp.dtype(out_dtype).itemsize,
        vmem_cap=vmem_cap,
    )

    # Pad B / C up to tile multiples (padded rows are zero and sliced off) instead of
    # silently falling back to a full-extent tile that can blow the VMEM budget.
    Bp = B if tb == B else _round_up(B, tb)
    Cp = C if tc == C else _round_up(C, tc)
    if (Bp, Cp) != (B, C):
        x = jnp.pad(x, ((0, Bp - B), (0, Cp - C), (0, 0)))
        f = jnp.pad(f, ((0, Cp - C), (0, 0)))

    grid = (Cp // tc, Bp // tb)  # C-tiles outer, B-tiles inner -> filter revisited, not re-DMA'd
    kernel = _make_kernel(HW, _pick_chunk(tb, tc, HW))

    out = pl.pallas_call(
        kernel,
        out_shape=jax.ShapeDtypeStruct((Bp, Cp), out_dtype),
        grid=grid,
        in_specs=[
            # streamed operand; if profiling shows exposed DMA, pipeline_mode=pl.Buffered(3) here
            pl.BlockSpec((tb, tc, HW), lambda ic, ib: (ib, ic, 0)),
            # VMEM-resident across the whole inner B sweep (block index ignores ib)
            pl.BlockSpec((tc, HW), lambda ic, ib: (ic, 0)),
        ],
        out_specs=pl.BlockSpec((tb, tc), lambda ic, ib: (ib, ic)),
        compiler_params=pltpu.CompilerParams(
            dimension_semantics=("parallel", "parallel"),
            vmem_limit_bytes=vmem_limit,
        ),
    )(x, f)

    if (Bp, Cp) != (B, C):
        out = out[:B, :C]
    return out  # (B, C)


def attention_ortho_forward(constant_filter, x_nchw):
    """Attention_Ortho.forward(FWT, input): apply FWT until spatial size is 1, return (B, -1)."""
    B = x_nchw.shape[0]
    out = x_nchw
    if out.shape[-1] > 1:
        # one FWT application collapses spatial to 1x1, terminating the while-loop
        out = gram_schmidt_transform_apply(out, constant_filter)
    return out.reshape(B, -1)


# --------------------------------------------------------------------------------------
if __name__ == "__main__":
    B, C, H, W = 2, 4, 16, 16

    key = jax.random.PRNGKey(0)
    k_filt, k_x, k_x2 = jax.random.split(key, 3)

    constant_filter = initialize_orthogonal_filters(k_filt, C, H, W)   # (C, H, H)
    x = jax.random.normal(k_x, (B, C, H, W), dtype=jnp.float32)        # NCHW input

    out = jax.block_until_ready(attention_ortho_forward(constant_filter, x))

    # sanity check vs. plain-JAX reference of the PyTorch math
    ref = jnp.sum(constant_filter[None] * x, axis=(-1, -2)).reshape(B, -1)
    assert out.shape == (B, C)
    assert jnp.allclose(out, ref, atol=1e-4, rtol=1e-4)

    # second check: larger spatial input exercises the adaptive-pooling path
    x2 = jax.random.normal(k_x2, (B, C, 2 * H, 2 * W), dtype=jnp.float32)
    out2 = jax.block_until_ready(attention_ortho_forward(constant_filter, x2))
    x2_pool = x2.reshape(B, C, H, 2, W, 2).mean(axis=(3, 5))
    ref2 = jnp.sum(constant_filter[None] * x2_pool, axis=(-1, -2)).reshape(B, -1)
    assert jnp.allclose(out2, ref2, atol=1e-4, rtol=1e-4)

    print("KERNEL_OK")
</pallas_src>

<mosaic_0001>
module attributes {stable_mosaic.version = 11 : i64} {
  func.func @kernel(%arg0: i32, %arg1: i32, %arg2: memref<2x4x256xf32, #tpu.memory_space<vmem>>, %arg3: memref<4x256xf32, #tpu.memory_space<vmem>>, %arg4: memref<2x4xf32, #tpu.memory_space<vmem>>) attributes {dimension_semantics = [#tpu.dimension_semantics<parallel>, #tpu.dimension_semantics<parallel>], iteration_bounds = array<i64: 1, 1>, scalar_prefetch = 0 : i64, scratch_operands = 0 : i64, tpu.core_type = #tpu.core_type<tc>, window_params = [{transform_indices = @transform_0, window_bounds = array<i64: 2, 4, 256>}, {transform_indices = @transform_1, window_bounds = array<i64: 4, 256>}, {transform_indices = @transform_2, window_bounds = array<i64: 2, 4>}]} {
    %cst = arith.constant 0.000000e+00 : f32
    %0 = vector.broadcast %cst : f32 to vector<2x4xf32>
    %c0 = arith.constant 0 : index
    %c0_0 = arith.constant 0 : index
    %c0_1 = arith.constant 0 : index
    %1 = vector.load %arg2[%c0, %c0_0, %c0_1] : memref<2x4x256xf32, #tpu.memory_space<vmem>>, vector<2x4x256xf32>
    %c0_2 = arith.constant 0 : index
    %c0_3 = arith.constant 0 : index
    %2 = vector.load %arg3[%c0_2, %c0_3] : memref<4x256xf32, #tpu.memory_space<vmem>>, vector<4x256xf32>
    %3 = vector.shape_cast %2 : vector<4x256xf32> to vector<1x4x256xf32>
    %4 = vector.broadcast %3 : vector<1x4x256xf32> to vector<2x4x256xf32>
    %5 = arith.mulf %1, %4 : vector<2x4x256xf32>
    %cst_4 = arith.constant dense<0.000000e+00> : vector<2x4xf32>
    %6 = vector.multi_reduction <add>, %5, %cst_4 [2] : vector<2x4x256xf32> to vector<2x4xf32>
    %7 = arith.addf %0, %6 : vector<2x4xf32>
    %c0_5 = arith.constant 0 : index
    %c0_6 = arith.constant 0 : index
    %8 = vector.load %arg4[%c0_5, %c0_6] : memref<2x4xf32, #tpu.memory_space<vmem>>, vector<2x4xf32>
    tpu.vector_store %arg4[%c0_5, %c0_6], %7 {strides = array<i32>} : memref<2x4xf32, #tpu.memory_space<vmem>>, vector<2x4xf32>,
    return
  }
  func.func @transform_0(%arg0: i32, %arg1: i32) -> (i32, i32, i32) {
    %c0_i32 = arith.constant 0 : i32
    %c0_i32_0 = arith.constant 0 : i32
    return %arg1, %arg0, %c0_i32 : i32, i32, i32
  }
  func.func @transform_1(%arg0: i32, %arg1: i32) -> (i32, i32) {
    %c0_i32 = arith.constant 0 : i32
    %c0_i32_0 = arith.constant 0 : i32
    return %arg0, %c0_i32 : i32, i32
  }
  func.func @transform_2(%arg0: i32, %arg1: i32) -> (i32, i32) {
    %c0_i32 = arith.constant 0 : i32
    return %arg1, %arg0 : i32, i32
  }
}

</mosaic_0001>

<bundles_post_ra>
// kernel: tpu_custom_call.1
= control target key start
LH: loop header
LB: loop body
LE: loop exit
PB: predicated region body
PF: predicated region fallthrough
CT: control target
= control target key end

     0   :  { %7 = vsyncpa [#allocation3], 0  ;;  %s228_s0 = inlined_call_operand.hbm [shape: f32[2,4,256], index: 0, kind: input, shape index: {}]   ;;  %s229_s1 = inlined_call_operand.hbm [shape: f32[4,256], index: 1, kind: input, shape index: {}]   ;;  %s230_s2 = inlined_call_operand.hbm [shape: f32[2,4], index: 2, kind: output, shape index: {}]  }
   0x1   :  { %8 = vsyncpa [#allocation6], 0 }
   0x2   :  { %9 = vsyncpa [#allocation4], 0  ;;  %s172_s9 = smov [#allocation2]   ;;  %s100_s13 = scalar_lea.hbm %s228_s0, 256 }
   0x3   :  { %s15_s10 = sshll.u32 %s172_s9, 4  ;;  %p101_p0 = scmp.ne.s32.totalorder %s228_s0, %s100_s13  ;;  %s16_s10 = int_to_ptr.vmem [resolvable:$true] %s15_s10 }
   0x4   :  { %p104_p1 = scmp.lt.u32.totalorder %s100_s13, %s228_s0 }
   0x6   :  { %p106_p2 = pnand %p104_p1, %p101_p0 }
   0x8   :  { %109 = shalt.err (!%p106_p2)
}
   0x9   :  { %s110_s18 = scalar_lea.vmem %s16_s10, 256  ;;  %p115_p4 = scmp.lt.s32.totalorder %s16_s10, %s16_s10 }
   0xa   :  { %p111_p3 = scmp.ne.s32.totalorder %s16_s10, %s110_s18  ;;  %p116_p5 = scmp.lt.s32.totalorder %s110_s18, %s110_s18 }
   0xc   :  { %p117_p6 = por %p116_p5, %p115_p4 }
   0xe   :  { %p118_p7 = pnand %p117_p6, %p111_p3 }
  0x10   :  { %121 = shalt.err (!%p118_p7)
}
  0x11   :  { %s173_s19 = smov 128   ;;  %s174_s20 = smov 8  }
  0x12   :  { %21 = dma.hbm_to_vmem [thread:$0]  %s228_s0, 256, %s16_s10, [#allocation3], %s173_s19, %s173_s19, %s174_s20  }
  0x13   :  { %s175_s23 = smov [#allocation5]   ;;  %s122_s27 = scalar_lea.hbm %s229_s1, 128 }
  0x14   :  { %s28_s24 = sshll.u32 %s175_s23, 4  ;;  %p123_p8 = scmp.ne.s32.totalorder %s229_s1, %s122_s27  ;;  %s29_s24 = int_to_ptr.vmem [resolvable:$true] %s28_s24 }
  0x15   :  { %p126_p9 = scmp.lt.u32.totalorder %s122_s27, %s229_s1 }
  0x17   :  { %p128_p10 = pnand %p126_p9, %p123_p8 }
  0x19   :  { %131 = shalt.err (!%p128_p10)
}
  0x1a   :  { %s132_s4 = scalar_lea.vmem %s29_s24, 128  ;;  %p137_p12 = scmp.lt.s32.totalorder %s29_s24, %s29_s24 }
  0x1b   :  { %p133_p11 = scmp.ne.s32.totalorder %s29_s24, %s132_s4  ;;  %p138_p13 = scmp.lt.s32.totalorder %s132_s4, %s132_s4 }
  0x1d   :  { %p139_p0 = por %p138_p13, %p137_p12 }
  0x1f   :  { %p140_p1 = pnand %p139_p0, %p133_p11 }
  0x21   :  { %143 = shalt.err (!%p140_p1)
}
  0x22   :  { %31 = dma.hbm_to_vmem [thread:$0]  %s229_s1, 128, %s29_s24, [#allocation6]  }
  0x23   :  { %166 = dma.done.wait [#allocation3], 256  }
  0x24   :  { %167 = vsyncadd [#allocation3], 4294967040 }
  0x25   :  { %168 = dma.done.wait [#allocation6], 128  }
  0x26   :  { %169 = vsyncadd [#allocation6], 4294967168  ;;  %v38_v0 = vld [vmem:[#allocation2] sm:$0xff]  ;;  %v40_v1 = vld [vmem:[#allocation5] sm:$0xff]  ;;  %vm49_vm0 = vcmask 1043456   ;;  %v64_v13 = vlaneseq  ;;  %s176_s1 = smov [#allocation7]  }
  0x27   :  { %v39_v2 = vld [vmem:[#allocation2 + $0x8] sm:$0xff]  ;;  %v41_v3 = vmul.f32 %v40_v1, %v38_v0  ;;  %s85_s6 = sshll.u32 %s176_s1, 4  ;;  %vm74_vm1 = vcmask 1041409   ;;  %vm77_vm2 = vcmask 25600   ;;  %s86_s6 = int_to_ptr.vmem [resolvable:$true] %s85_s6 }
  0x28   :  { %v42_v4 = vmul.f32 %v40_v1, %v39_v2  ;;  %v65_v14 = vand.u32 127, %v64_v13  ;;  %v67_v15 = vshrl.u32 %v64_v13, 7  ;;  %s144_s7 = scalar_lea.vmem %s86_s6, 32  ;;  %p149_p3 = scmp.lt.s32.totalorder %s86_s6, %s86_s6 }
  0x29   :  { %v45_v5 = vcombine.high %v41_v3, %v41_v3  ;;  %v50_v6 = vsel %vm49_vm0, %v41_v3, 0.0  ;;  %p145_p2 = scmp.ne.s32.totalorder %s86_s6, %s144_s7  ;;  %p150_p4 = scmp.lt.s32.totalorder %s144_s7, %s144_s7 }
  0x2a   :  { %v46_v7 = vcombine.high %v42_v4, %v42_v4  ;;  %v55_v9 = vsel %vm49_vm0, %v42_v4, 0.0  ;;  %v68_v17 = vsub.s32 %v65_v14, %v67_v15 }
  0x2b   :  { %v51_v8 = vsel %vm49_vm0, %v45_v5, 0.0  ;;  %p151_p5 = por %p150_p4, %p149_p3 }
  0x2c   :  { %v56_v10 = vsel %vm49_vm0, %v46_v7, 0.0  ;;  %v52_v11 = vadd.f32 %v51_v8, %v50_v6 }
  0x2d   :  { %v57_v12 = vadd.f32 %v56_v10, %v55_v9  ;;  %p152_p6 = pnand %p151_p5, %p145_p2 }
  0x2e   :  { %53 = vadd.xlane.f32.xlu0 %v52_v11 }
  0x32   :  { %58 = vadd.xlane.f32.xlu0 %v57_v12 }
  0xbb   :  { %v54_v16 = vpop.xlane.xlu0 %53 }
  0xbc   :  { %v69_v19 = vrot.slane %v54_v16, %v68_v17 }
  0xbf   :  { %v59_v18 = vpop.xlane.xlu0 %58 }
  0xc0   :  { %v73_v20 = vrot.slane %v59_v18, %v68_v17 }
  0xc2   :  { %v75_v21 = vsel %vm74_vm1, %v73_v20, %v69_v19 }
  0xc3   :  { %78 = vst.msk [vmem:[#allocation7] sm:$0x3] %vm77_vm2, %v75_v21 }
  0xc4   :  { %155 = shalt.err (!%p152_p6)
}
  0xc5   :  { %s156_s10 = scalar_lea.hbm %s230_s2, 32 }
  0xc6   :  { %p157_p7 = scmp.ne.s32.totalorder %s230_s2, %s156_s10  ;;  %p160_p8 = scmp.lt.u32.totalorder %s156_s10, %s230_s2 }
  0xc8   :  { %p162_p9 = pnand %p160_p8, %p157_p7 }
  0xca   :  { %165 = shalt.err (!%p162_p9)
}
  0xcb   :  { %88 = dma.vmem_to_hbm [thread:$0]  %s86_s6, 32, %s230_s2, [#allocation4]  }
  0xcc   :  { %170 = dma.done.wait [#allocation4], 32  }
  0xcd   :  { %171 = vsyncadd [#allocation4], 4294967264 }
  0xce   :  { %92 = vsyncpa [#allocation3], 1 }
  0xcf   :  { %93 = vsyncpa [#allocation6], 1 }
  0xd0   :  { %94 = vsyncpa [#allocation4], 1 }

</bundles_post_ra>
